<compile_context>
chip_gen: v7x
topology: tpu7x:2x2x1
jax: 0.10.0
libtpu: 0.0.40
codegen_flags: <defaults>
</compile_context>

<pallas_src>
import jax
import jax.numpy as jnp
import numpy as np
from jax import lax
from jax.experimental import pallas as pl
from jax.experimental.pallas import tpu as pltpu


# ------------------------------ Pallas kernel --------------------------------

def _fused_forward_kernel(xcol_ref, w2m_ref, b2_ref, w1cat_ref, b1_ref,
                          wlin_ref, blin_ref, o_ref, flat_ref):
    f32, bf16 = jnp.float32, jnp.bfloat16

    # ---- Conv2d as an im2col matmul: (8, 40) @ (40, 256) -> (8, 256) -------------
    h1 = jnp.dot(w2m_ref[...], xcol_ref[0], preferred_element_type=f32)
    h1 = h1 + b2_ref[...]                                   # bias in f32, (C, L)
    C, L = h1.shape

    # ---- Conv1d (k=3, s=1, p=1): +-1 taps via XLU rolls + boundary-column masks.
    #      roll is circular, so the wrapped column must be zeroed (zero padding). ----
    lane = lax.broadcasted_iota(jnp.int32, (C, L), 1)
    left = jnp.where(lane == 0, 0.0, pltpu.roll(h1, shift=1, axis=1))       # h1[:, l-1]
    right = jnp.where(lane == L - 1, 0.0, pltpu.roll(h1, shift=L - 1, axis=1))  # h1[:, l+1]

    #      Single fused tap matmul: (8, 24) @ (24, 256) -> (8, 256)
    hcat = jnp.concatenate([left, h1, right], axis=0).astype(bf16)          # (3C, L)
    h2 = jnp.dot(w1cat_ref[...], hcat, preferred_element_type=f32)
    h2 = h2 + b1_ref[...]                                   # (C, L) f32

    # ---- Linear on the channel-major flatten (c*L + l) of h2: one matmul. ---------
    #      Flatten through a small VMEM scratch (explicit sublane->lane relayout;
    #      8 static, 128-aligned lane-slice stores + one (1, 2048) load).
    for c in range(C):                                      # static unroll
        flat_ref[:, c * L:(c + 1) * L] = h2[c:c + 1, :]
    h2_flat = flat_ref[...].astype(bf16)                    # (1, 2048) bf16
    acc = blin_ref[...] + jnp.dot(h2_flat, wlin_ref[...], preferred_element_type=f32)
    o_ref[0] = acc.astype(o_ref.dtype)                      # (1, 32)


# ----------------------------- CheckpointModel -------------------------------

def checkpoint_model_forward(params, x):
    """Forward of CheckpointModel wrapping the synthetic inner model.

    deepspeed.checkpointing.checkpoint is forward-identity (it only changes backward
    memory behaviour), so the forward math is the plain layers, fused into one kernel.
    """
    # TODO(synk): if gradients are needed, wrap with jax.checkpoint to mirror the
    # activation-recomputation memory behaviour of the *WCkp layers.
    f32, bf16 = jnp.float32, jnp.bfloat16
    N, Cin, H, W = x.shape
    Cout, _, KH, KW = params["w_conv2d"].shape
    C_mid, _, K1 = params["w_conv1d"].shape
    L = H * W
    lin_out, lin_in = params["w_lin"].shape
    assert lin_in == C_mid * L and K1 == 3 and (KH, KW) == (3, 3)

    Ktap = Cin * KH * KW                      # 36
    Kpad = ((Ktap + 7) // 8) * 8              # 40 (sublane-aligned contraction dim)

    # ---- trace-time layout prep (tiny, transpose-free for the activations) ----------
    xp = jnp.pad(x, ((0, 0), (0, 0), (1, 1), (1, 1)))
    cols = [xp[:, :, kh:kh + H, kw:kw + W] for kh in range(KH) for kw in range(KW)]
    xcol = jnp.stack(cols, axis=2).reshape(N, Ktap, L)        # rows: ci*9 + kh*3 + kw
    xcol = jnp.pad(xcol, ((0, 0), (0, Kpad - Ktap), (0, 0))).astype(bf16)   # (N, 40, 256)

    w2m = jnp.pad(params["w_conv2d"].reshape(Cout, Ktap),
                  ((0, 0), (0, Kpad - Ktap))).astype(bf16)    # (8, 40)
    b2 = params["b_conv2d"].reshape(Cout, 1).astype(f32)      # (8, 1)

    # conv1d weight rearranged to (Cout, 3*C_mid), column index = tap*C_mid + channel,
    # matching the in-kernel [left; center; right] sublane concatenation.
    w1cat = jnp.transpose(params["w_conv1d"], (0, 2, 1)).reshape(Cout, K1 * C_mid)
    w1cat = w1cat.astype(bf16)                                # (8, 24)
    b1 = params["b_conv1d"].reshape(C_mid, 1).astype(f32)     # (8, 1)

    # Linear weight: rows indexed by the channel-major flatten c*L + l (PyTorch order).
    wlin = jnp.transpose(params["w_lin"]).astype(bf16)        # (2048, 32)
    blin = params["b_lin"].reshape(1, lin_out).astype(f32)    # (1, 32)

    flops = N * (2 * Cout * Kpad * L              # conv2d
                 + 2 * Cout * (K1 * C_mid) * L    # fused conv1d taps
                 + 2 * (C_mid * L) * lin_out)     # linear
    bytes_accessed = (xcol.size * 2 + w2m.size * 2 + w1cat.size * 2 + wlin.size * 2
                      + (b2.size + b1.size + blin.size) * 4
                      + N * lin_out * 4)

    out = pl.pallas_call(
        _fused_forward_kernel,
        out_shape=jax.ShapeDtypeStruct((N, 1, lin_out), f32),
        grid=(N,),
        in_specs=[
            pl.BlockSpec((1, Kpad, L), lambda i: (i, 0, 0)),          # per-sample patches
            pl.BlockSpec((Cout, Kpad), lambda i: (0, 0)),             # conv2d weight (bf16)
            pl.BlockSpec((Cout, 1), lambda i: (0, 0)),                # conv2d bias   (f32)
            pl.BlockSpec((Cout, K1 * C_mid), lambda i: (0, 0)),       # fused conv1d weight
            pl.BlockSpec((C_mid, 1), lambda i: (0, 0)),               # conv1d bias   (f32)
            pl.BlockSpec((C_mid * L, lin_out), lambda i: (0, 0)),     # linear weight (bf16)
            pl.BlockSpec((1, lin_out), lambda i: (0, 0)),             # linear bias   (f32)
        ],
        out_specs=pl.BlockSpec((1, 1, lin_out), lambda i: (i, 0, 0)),
        scratch_shapes=[pltpu.VMEM((1, C_mid * L), f32)],             # flatten staging
        compiler_params=pltpu.CompilerParams(
            dimension_semantics=("parallel",),       # batch shards across v7x's 2 TCs
            vmem_limit_bytes=32 * 1024 * 1024),
        cost_estimate=pl.CostEstimate(flops=flops, transcendentals=0,
                                      bytes_accessed=bytes_accessed),
    )(xcol, w2m, b2, w1cat, b1, wlin, blin)
    return out.reshape(N, lin_out)


# ------------------------------- reference -----------------------------------

def reference_forward(params, x):
    """Pure-JAX f32 reference (no Pallas) for validation."""
    h = lax.conv_general_dilated(
        x, params["w_conv2d"], window_strides=(1, 1), padding=((1, 1), (1, 1)),
        dimension_numbers=("NCHW", "OIHW", "NCHW"))
    h = h + params["b_conv2d"][None, :, None, None]
    N, C, H, W = h.shape
    h = h.reshape(N, C, H * W)
    h = lax.conv_general_dilated(
        h, params["w_conv1d"], window_strides=(1,), padding=((1, 1),),
        dimension_numbers=("NCH", "OIH", "NCH"))
    h = h + params["b_conv1d"][None, :, None]
    h = h.reshape(N, -1)
    return h @ params["w_lin"].T + params["b_lin"]


# ---------------------------------- main --------------------------------------

if __name__ == "__main__":
    key = jax.random.PRNGKey(0)
    kx, k1, k2, k3, k4, k5, k6 = jax.random.split(key, 7)

    N, Cin, H, W = 2, 4, 16, 16
    C_mid = 8
    L = H * W
    lin_in, lin_out = C_mid * L, 32

    x = jax.random.normal(kx, (N, Cin, H, W), dtype=jnp.float32)

    params = {
        "w_conv2d": 0.05 * jax.random.normal(k1, (C_mid, Cin, 3, 3), jnp.float32),
        "b_conv2d": 0.05 * jax.random.normal(k2, (C_mid,), jnp.float32),
        "w_conv1d": 0.05 * jax.random.normal(k3, (C_mid, C_mid, 3), jnp.float32),
        "b_conv1d": 0.05 * jax.random.normal(k4, (C_mid,), jnp.float32),
        "w_lin":    0.05 * jax.random.normal(k5, (lin_out, lin_in), jnp.float32),
        "b_lin":    0.05 * jax.random.normal(k6, (lin_out,), jnp.float32),
    }

    out = jax.jit(checkpoint_model_forward)(params, x)
    out = jax.block_until_ready(out)
    assert out.shape == (N, lin_out) and out.dtype == jnp.float32

    ref = reference_forward(params, x)
    np.testing.assert_allclose(np.asarray(out), np.asarray(ref), rtol=2e-2, atol=2e-2)

    print("KERNEL_OK")
</pallas_src>

<mosaic_0001>
module attributes {stable_mosaic.version = 11 : i64} {
  func.func @_fused_forward_kernel(%arg0: i32, %arg1: memref<1x40x256xbf16, #tpu.memory_space<vmem>>, %arg2: memref<8x40xbf16, #tpu.memory_space<vmem>>, %arg3: memref<8x1xf32, #tpu.memory_space<vmem>>, %arg4: memref<8x24xbf16, #tpu.memory_space<vmem>>, %arg5: memref<8x1xf32, #tpu.memory_space<vmem>>, %arg6: memref<2048x32xbf16, #tpu.memory_space<vmem>>, %arg7: memref<1x32xf32, #tpu.memory_space<vmem>>, %arg8: memref<1x1x32xf32, #tpu.memory_space<vmem>>, %arg9: memref<1x2048xf32, #tpu.memory_space<vmem>>) attributes {dimension_semantics = [#tpu.dimension_semantics<parallel>], iteration_bounds = array<i64: 2>, scalar_prefetch = 0 : i64, scratch_operands = 1 : i64, tpu.core_type = #tpu.core_type<tc>, window_params = [{transform_indices = @transform_0, window_bounds = array<i64: 1, 40, 256>}, {pipeline_mode = #tpu.pipeline_mode<synchronous>, transform_indices = @transform_1, window_bounds = array<i64: 8, 40>}, {pipeline_mode = #tpu.pipeline_mode<synchronous>, transform_indices = @transform_2, window_bounds = array<i64: 8, 1>}, {pipeline_mode = #tpu.pipeline_mode<synchronous>, transform_indices = @transform_3, window_bounds = array<i64: 8, 24>}, {pipeline_mode = #tpu.pipeline_mode<synchronous>, transform_indices = @transform_4, window_bounds = array<i64: 8, 1>}, {pipeline_mode = #tpu.pipeline_mode<synchronous>, transform_indices = @transform_5, window_bounds = array<i64: 2048, 32>}, {pipeline_mode = #tpu.pipeline_mode<synchronous>, transform_indices = @transform_6, window_bounds = array<i64: 1, 32>}, {transform_indices = @transform_7, window_bounds = array<i64: 1, 1, 32>}]} {
    %c0 = arith.constant 0 : index
    %c0_0 = arith.constant 0 : index
    %0 = vector.load %arg2[%c0, %c0_0] : memref<8x40xbf16, #tpu.memory_space<vmem>>, vector<8x40xbf16>
    %c0_1 = arith.constant 0 : index
    %c0_2 = arith.constant 0 : index
    %c0_3 = arith.constant 0 : index
    %1 = vector.load %arg1[%c0_1, %c0_2, %c0_3] : memref<1x40x256xbf16, #tpu.memory_space<vmem>>, vector<1x40x256xbf16>
    %2 = vector.shape_cast %1 : vector<1x40x256xbf16> to vector<40x256xbf16>
    %cst = arith.constant dense<0.000000e+00> : vector<8x256xf32>
    %3 = tpu.matmul %0, %2, %cst {dimension_numbers = #tpu.dot_dimension_numbers<[1], [0], [0], [1], [0, 0, 1, 1], [], []>} : vector<8x40xbf16>, vector<40x256xbf16>, vector<8x256xf32> -> vector<8x256xf32>
    %c0_4 = arith.constant 0 : index
    %c0_5 = arith.constant 0 : index
    %4 = vector.load %arg3[%c0_4, %c0_5] : memref<8x1xf32, #tpu.memory_space<vmem>>, vector<8x1xf32>
    %5 = vector.broadcast %4 : vector<8x1xf32> to vector<8x256xf32>
    %6 = arith.addf %3, %5 : vector<8x256xf32>
    %7 = tpu.iota {dimensions = array<i32: 1>} : vector<8x256xi32>
    %c0_i32 = arith.constant 0 : i32
    %8 = vector.broadcast %c0_i32 : i32 to vector<8x256xi32>
    %9 = arith.cmpi eq, %7, %8 : vector<8x256xi32>
    %c1_i32 = arith.constant 1 : i32
    %10 = tpu.dynamic_rotate %6 by %c1_i32 dim 1 : vector<8x256xf32>, i32 -> vector<8x256xf32>
    %cst_6 = arith.constant 0.000000e+00 : f32
    %11 = vector.broadcast %cst_6 : f32 to vector<8x256xf32>
    %12 = arith.select %9, %11, %10 : vector<8x256xi1>, vector<8x256xf32>
    %c255_i32 = arith.constant 255 : i32
    %13 = vector.broadcast %c255_i32 : i32 to vector<8x256xi32>
    %14 = arith.cmpi eq, %7, %13 : vector<8x256xi32>
    %c255_i32_7 = arith.constant 255 : i32
    %15 = tpu.dynamic_rotate %6 by %c255_i32_7 dim 1 : vector<8x256xf32>, i32 -> vector<8x256xf32>
    %cst_8 = arith.constant 0.000000e+00 : f32
    %16 = vector.broadcast %cst_8 : f32 to vector<8x256xf32>
    %17 = arith.select %14, %16, %15 : vector<8x256xi1>, vector<8x256xf32>
    %18 = tpu.concatenate %12, %6, %17 in 0 : vector<8x256xf32>, vector<8x256xf32>, vector<8x256xf32> -> vector<24x256xf32>
    %19 = arith.truncf %18 : vector<24x256xf32> to vector<24x256xbf16>
    %c0_9 = arith.constant 0 : index
    %c0_10 = arith.constant 0 : index
    %20 = vector.load %arg4[%c0_9, %c0_10] : memref<8x24xbf16, #tpu.memory_space<vmem>>, vector<8x24xbf16>
    %cst_11 = arith.constant dense<0.000000e+00> : vector<8x256xf32>
    %21 = tpu.matmul %20, %19, %cst_11 {dimension_numbers = #tpu.dot_dimension_numbers<[1], [0], [0], [1], [0, 0, 1, 1], [], []>} : vector<8x24xbf16>, vector<24x256xbf16>, vector<8x256xf32> -> vector<8x256xf32>
    %c0_12 = arith.constant 0 : index
    %c0_13 = arith.constant 0 : index
    %22 = vector.load %arg5[%c0_12, %c0_13] : memref<8x1xf32, #tpu.memory_space<vmem>>, vector<8x1xf32>
    %23 = vector.broadcast %22 : vector<8x1xf32> to vector<8x256xf32>
    %24 = arith.addf %21, %23 : vector<8x256xf32>
    %25 = vector.extract_strided_slice %24 {offsets = [0, 0], sizes = [1, 256], strides = [1, 1]} : vector<8x256xf32> to vector<1x256xf32>
    %c0_14 = arith.constant 0 : index
    %c0_15 = arith.constant 0 : index
    %26 = vector.load %arg9[%c0_14, %c0_15] : memref<1x2048xf32, #tpu.memory_space<vmem>>, vector<1x256xf32>
    tpu.vector_store %arg9[%c0_14, %c0_15], %25 {strides = array<i32>} : memref<1x2048xf32, #tpu.memory_space<vmem>>, vector<1x256xf32>,
    %27 = vector.extract_strided_slice %24 {offsets = [1, 0], sizes = [1, 256], strides = [1, 1]} : vector<8x256xf32> to vector<1x256xf32>
    %c0_16 = arith.constant 0 : index
    %c256 = arith.constant 256 : index
    %28 = vector.load %arg9[%c0_16, %c256] : memref<1x2048xf32, #tpu.memory_space<vmem>>, vector<1x256xf32>
    tpu.vector_store %arg9[%c0_16, %c256], %27 {strides = array<i32>} : memref<1x2048xf32, #tpu.memory_space<vmem>>, vector<1x256xf32>,
    %29 = vector.extract_strided_slice %24 {offsets = [2, 0], sizes = [1, 256], strides = [1, 1]} : vector<8x256xf32> to vector<1x256xf32>
    %c0_17 = arith.constant 0 : index
    %c512 = arith.constant 512 : index
    %30 = vector.load %arg9[%c0_17, %c512] : memref<1x2048xf32, #tpu.memory_space<vmem>>, vector<1x256xf32>
    tpu.vector_store %arg9[%c0_17, %c512], %29 {strides = array<i32>} : memref<1x2048xf32, #tpu.memory_space<vmem>>, vector<1x256xf32>,
    %31 = vector.extract_strided_slice %24 {offsets = [3, 0], sizes = [1, 256], strides = [1, 1]} : vector<8x256xf32> to vector<1x256xf32>
    %c0_18 = arith.constant 0 : index
    %c768 = arith.constant 768 : index
    %32 = vector.load %arg9[%c0_18, %c768] : memref<1x2048xf32, #tpu.memory_space<vmem>>, vector<1x256xf32>
    tpu.vector_store %arg9[%c0_18, %c768], %31 {strides = array<i32>} : memref<1x2048xf32, #tpu.memory_space<vmem>>, vector<1x256xf32>,
    %33 = vector.extract_strided_slice %24 {offsets = [4, 0], sizes = [1, 256], strides = [1, 1]} : vector<8x256xf32> to vector<1x256xf32>
    %c0_19 = arith.constant 0 : index
    %c1024 = arith.constant 1024 : index
    %34 = vector.load %arg9[%c0_19, %c1024] : memref<1x2048xf32, #tpu.memory_space<vmem>>, vector<1x256xf32>
    tpu.vector_store %arg9[%c0_19, %c1024], %33 {strides = array<i32>} : memref<1x2048xf32, #tpu.memory_space<vmem>>, vector<1x256xf32>,
    %35 = vector.extract_strided_slice %24 {offsets = [5, 0], sizes = [1, 256], strides = [1, 1]} : vector<8x256xf32> to vector<1x256xf32>
    %c0_20 = arith.constant 0 : index
    %c1280 = arith.constant 1280 : index
    %36 = vector.load %arg9[%c0_20, %c1280] : memref<1x2048xf32, #tpu.memory_space<vmem>>, vector<1x256xf32>
    tpu.vector_store %arg9[%c0_20, %c1280], %35 {strides = array<i32>} : memref<1x2048xf32, #tpu.memory_space<vmem>>, vector<1x256xf32>,
    %37 = vector.extract_strided_slice %24 {offsets = [6, 0], sizes = [1, 256], strides = [1, 1]} : vector<8x256xf32> to vector<1x256xf32>
    %c0_21 = arith.constant 0 : index
    %c1536 = arith.constant 1536 : index
    %38 = vector.load %arg9[%c0_21, %c1536] : memref<1x2048xf32, #tpu.memory_space<vmem>>, vector<1x256xf32>
    tpu.vector_store %arg9[%c0_21, %c1536], %37 {strides = array<i32>} : memref<1x2048xf32, #tpu.memory_space<vmem>>, vector<1x256xf32>,
    %39 = vector.extract_strided_slice %24 {offsets = [7, 0], sizes = [1, 256], strides = [1, 1]} : vector<8x256xf32> to vector<1x256xf32>
    %c0_22 = arith.constant 0 : index
    %c1792 = arith.constant 1792 : index
    %40 = vector.load %arg9[%c0_22, %c1792] : memref<1x2048xf32, #tpu.memory_space<vmem>>, vector<1x256xf32>
    tpu.vector_store %arg9[%c0_22, %c1792], %39 {strides = array<i32>} : memref<1x2048xf32, #tpu.memory_space<vmem>>, vector<1x256xf32>,
    %c0_23 = arith.constant 0 : index
    %c0_24 = arith.constant 0 : index
    %41 = vector.load %arg9[%c0_23, %c0_24] : memref<1x2048xf32, #tpu.memory_space<vmem>>, vector<1x2048xf32>
    %42 = arith.truncf %41 : vector<1x2048xf32> to vector<1x2048xbf16>
    %c0_25 = arith.constant 0 : index
    %c0_26 = arith.constant 0 : index
    %43 = vector.load %arg7[%c0_25, %c0_26] : memref<1x32xf32, #tpu.memory_space<vmem>>, vector<1x32xf32>
    %c0_27 = arith.constant 0 : index
    %c0_28 = arith.constant 0 : index
    %44 = vector.load %arg6[%c0_27, %c0_28] : memref<2048x32xbf16, #tpu.memory_space<vmem>>, vector<2048x32xbf16>
    %cst_29 = arith.constant dense<0.000000e+00> : vector<1x32xf32>
    %45 = tpu.matmul %42, %44, %cst_29 {dimension_numbers = #tpu.dot_dimension_numbers<[1], [0], [0], [1], [0, 0, 1, 1], [], []>} : vector<1x2048xbf16>, vector<2048x32xbf16>, vector<1x32xf32> -> vector<1x32xf32>
    %46 = arith.addf %43, %45 : vector<1x32xf32>
    %c0_30 = arith.constant 0 : index
    %c0_31 = arith.constant 0 : index
    %c0_32 = arith.constant 0 : index
    %47 = vector.load %arg8[%c0_30, %c0_31, %c0_32] : memref<1x1x32xf32, #tpu.memory_space<vmem>>, vector<1x1x32xf32>
    %48 = vector.shape_cast %47 : vector<1x1x32xf32> to vector<1x32xf32>
    %49 = vector.shape_cast %46 : vector<1x32xf32> to vector<1x1x32xf32>
    tpu.vector_store %arg8[%c0_30, %c0_31, %c0_32], %49 {strides = array<i32>} : memref<1x1x32xf32, #tpu.memory_space<vmem>>, vector<1x1x32xf32>,
    return
  }
  func.func @transform_0(%arg0: i32) -> (i32, i32, i32) {
    %c0_i32 = arith.constant 0 : i32
    %c0_i32_0 = arith.constant 0 : i32
    %c0_i32_1 = arith.constant 0 : i32
    return %arg0, %c0_i32, %c0_i32_0 : i32, i32, i32
  }
  func.func @transform_1(%arg0: i32) -> (i32, i32) {
    %c0_i32 = arith.constant 0 : i32
    %c0_i32_0 = arith.constant 0 : i32
    %c0_i32_1 = arith.constant 0 : i32
    return %c0_i32, %c0_i32_0 : i32, i32
  }
  func.func @transform_2(%arg0: i32) -> (i32, i32) {
    %c0_i32 = arith.constant 0 : i32
    %c0_i32_0 = arith.constant 0 : i32
    %c0_i32_1 = arith.constant 0 : i32
    return %c0_i32, %c0_i32_0 : i32, i32
  }
  func.func @transform_3(%arg0: i32) -> (i32, i32) {
    %c0_i32 = arith.constant 0 : i32
    %c0_i32_0 = arith.constant 0 : i32
    %c0_i32_1 = arith.constant 0 : i32
    return %c0_i32, %c0_i32_0 : i32, i32
  }
  func.func @transform_4(%arg0: i32) -> (i32, i32) {
    %c0_i32 = arith.constant 0 : i32
    %c0_i32_0 = arith.constant 0 : i32
    %c0_i32_1 = arith.constant 0 : i32
    return %c0_i32, %c0_i32_0 : i32, i32
  }
  func.func @transform_5(%arg0: i32) -> (i32, i32) {
    %c0_i32 = arith.constant 0 : i32
    %c0_i32_0 = arith.constant 0 : i32
    %c0_i32_1 = arith.constant 0 : i32
    return %c0_i32, %c0_i32_0 : i32, i32
  }
  func.func @transform_6(%arg0: i32) -> (i32, i32) {
    %c0_i32 = arith.constant 0 : i32
    %c0_i32_0 = arith.constant 0 : i32
    %c0_i32_1 = arith.constant 0 : i32
    return %c0_i32, %c0_i32_0 : i32, i32
  }
  func.func @transform_7(%arg0: i32) -> (i32, i32, i32) {
    %c0_i32 = arith.constant 0 : i32
    %c0_i32_0 = arith.constant 0 : i32
    %c0_i32_1 = arith.constant 0 : i32
    return %arg0, %c0_i32, %c0_i32_0 : i32, i32, i32
  }
}

</mosaic_0001>

<bundles_post_ra>
// kernel: checkpoint_model_forward.1
= control target key start
LH: loop header
LB: loop body
LE: loop exit
PB: predicated region body
PF: predicated region fallthrough
CT: control target
= control target key end

     0   :  { %12 = vsyncpa [#allocation4], 0  ;;  %s3264_s0 = inlined_call_operand.vmem [shape: bf16[2,40,256], index: 0, kind: input, shape index: {}]   ;;  %s3265_s1 = inlined_call_operand.vmem [shape: bf16[8,40], index: 1, kind: input, shape index: {}]   ;;  %s3266_s2 = inlined_call_operand.vmem [shape: f32[8,1], index: 2, kind: input, shape index: {}]   ;;  %s3267_s3 = inlined_call_operand.vmem [shape: bf16[8,24], index: 3, kind: input, shape index: {}]   ;;  %s3268_s4 = inlined_call_operand.vmem [shape: f32[8,1], index: 4, kind: input, shape index: {}]   ;;  %s3269_s5 = inlined_call_operand.vmem [shape: bf16[2048,32], index: 5, kind: input, shape index: {}]   ;;  %s3270_s6 = inlined_call_operand.vmem [shape: f32[1,32], index: 6, kind: input, shape index: {}]   ;;  %s3271_s7 = inlined_call_operand.hbm [shape: f32[2,1,32], index: 7, kind: output, shape index: {}]  }
   0x1   :  { %14 = vsyncpa [#allocation4 + $0x1], 0  ;;  %s2671_s24 = smov 0   ;;  %s2673_s25 = smov 0  }
   0x2   :  { %s2675_s26 = smov 0   ;;  %s2677_s27 = smov 0  }
   0x3 LB: > { %s2692_s28 = sadd.s32 4294967295, %s2623_s27   ;;  %s2041_s29 = sadd.s32 4294967294, %s2623_s27   ;;  %s2623_s27 = sphi %s2677_s27, %s3279_s27   ;;  %s2619_s26 = sphi %s2675_s26, %s3278_s26   ;;  %s2615_s25 = sphi %s2673_s25, %s3277_s25   ;;  %s2611_s24 = sphi %s2671_s24, %s3276_s24  }
   0x4   : > { %s2696_s30 = sadd.s32 1, %s2623_s27   ;;  %s179_s8 = sadd.s32 1, %s2619_s26 }
   0x5   : > { %s176_s9 = ssub.s32 %s2623_s27, %s2696_s30  ;;  %p189_p0 = scmp.ne.s32.totalorder %s2619_s26, %s2615_s25 }
   0x6   : > { %p177_p1 = scmp.eq.s32.totalorder %s176_s9, 0  ;;  %p190_p2 = scmp.eq.s32.totalorder %s2692_s28, 1 }
   0x7   : > { %p195_p3 = scmp.ne.s32.totalorder %s2615_s25, %s2611_s24  ;;  %p196_p4 = scmp.eq.s32.totalorder %s2041_s29, 1 }
   0x8   : > { %s2707_s10 = scalar_select %p177_p1, %s2619_s26, %s179_s8  }
   0x9   : > { %p2709_p5 = por %p190_p2, %p189_p0  ;;  %p2713_p6 = por %p196_p4, %p195_p3 }
   0xa   : > { %p2044_p7 = scmp.ge.s32.totalorder %s2623_s27, 1  ;;  %p240_p8 = scmp.lt.s32.totalorder %s2623_s27, 3 }
   0xc   : > { %p241_p9 = pnand %p2044_p7, %p240_p8 }
   0xd   : > { %p271_p10 = scmp.lt.s32.totalorder (!%p241_p9), %s2692_s28, 1  ;;  %v2625_v0 = vmov (!%p241_p9), 0   ;;  %v283_v1 = vld [vmem:[%s3266_s2] sm:$0xff] (!%p241_p9)  ;;  %vm318_vm0 = vcmask (!%p241_p9), 1043456   ;;  %vm314_vm1 = vcmask (!%p241_p9), 326656   ;;  %s2626_s22 = smov (!%p241_p9), 127   ;;  %v366_v24 = vlaneseq (!%p241_p9) }
   0xe   : > { %244 = sbr.rel (%p241_p9) target bundleno = 953 (0x3b9), region = 48  ;;  %357 = vmatprep.mubr.bf16.mxu0 (!%p241_p9), %v2625_v0  ;;  %2413 = vset.pattern.permute.xlu0 (!%p241_p9), %v2625_v0  ;;  %v277_v10 = vld [vmem:[%s3265_s1] sm:$0xf] (!%p241_p9)  ;;  %s2627_s23 = smov (!%p241_p9), 1   ;;  %v2438_v22 = vld [vmem:[%s3269_s5 + $0xc8] sm:$0xff] (!%p241_p9)   ;;  %vm2628_vm6 = vmmov (!%p241_p9), 1  }
   0xf   : > { %286 = vperm.xlu0 (!%p241_p9), %2413, %v283_v1   ;;  %444 = vmatprep.mubr.bf16.mxu1 (!%p241_p9), %v2625_v0  ;;  %v396_v19 = vld [vmem:[%s3268_s4] sm:$0xff] (!%p241_p9)  ;;  %v2440_v23 = vld [vmem:[%s3269_s5 + $0x88] sm:$0xff] (!%p241_p9)   ;;  %v367_v25 = vand.u32 (!%p241_p9), 127, %v366_v24  ;;  %vm402_vm8 = vcmask (!%p241_p9), 195584   ;;  %v2441_v48 = vld [vmem:[%s3269_s5 + $0x50] sm:$0xff] (!%p241_p9)   ;;  %vm2848_vm9 = vcmp.lt.s32.totalorder (!%p241_p9), %v366_v24, 256 }
  0x10   : > { %2424 = vset.pattern.permute.xlu1 (!%p241_p9), %v2625_v0  ;;  %v2434_v20 = vld [vmem:[%s3269_s5 + $0xc0] sm:$0xff] (!%p241_p9)   ;;  %v2437_v46 = vld [vmem:[%s3269_s5 + $0x48] sm:$0xff] (!%p241_p9)   ;;  %v2442_v49 = vld [vmem:[%s3269_s5 + $0xd0] sm:$0xff] (!%p241_p9)   ;;  %s269_s18 = sand.u32 (!%p241_p9), 1, %s2615_s25   ;;  %s2188_s21 = sshll.u32 (!%p241_p9), %s2692_s28, 4  ;;  %vm1971_vm10 = vcmask (!%p241_p9), 253952  }
  0x11   : > { %v2436_v21 = vld [vmem:[%s3269_s5 + $0x80] sm:$0xff] (!%p241_p9)   ;;  %v368_v26 = vadd.s32 (!%p241_p9), 128, %v367_v25  ;;  %vm386_vm2 = vcmp.lt.s32.totalorder (!%p241_p9), %v367_v25, 127  ;;  %vm375_vm4 = vcmp.lt.s32.totalorder (!%p241_p9), %v367_v25, 1  ;;  %vm2191_vm5 = vcmp.ne.s32.totalorder (!%p241_p9), %v367_v25, 0  ;;  %v2439_v47 = vld [vmem:[%s3269_s5 + $0x8] sm:$0xff] (!%p241_p9)   ;;  %s3222_s9 = scalar_lea.hbm (!%p241_p9), %s3271_s7, %s2188_s21 }
  0x12   : > { %vm2055_vm7 = vmpackc.low (!%p241_p9), %vm2628_vm6, %vm2191_vm5  ;;  %v2433_v42 = vld [vmem:[%s3269_s5 + $0x40] sm:$0xff] (!%p241_p9)   ;;  %v2443_v50 = vld [vmem:[%s3269_s5 + $0x10] sm:$0xff] (!%p241_p9)   ;;  %s1974_s13 = scalar_lea.sflag (!%p241_p9), [#allocation4], %s269_s18 }
  0x13   : > { %vm381_vm3 = vcmp.eq.s32.totalorder (!%p241_p9), %v368_v26, 255  ;;  %v395_v44 = vld [vmem:[%s3267_s3] sm:$0xf] (!%p241_p9)  ;;  %v2444_v51 = vld [vmem:[%s3269_s5 + $0x90] sm:$0xff] (!%p241_p9)   ;;  %v2445_v52 = vld [vmem:[%s3269_s5 + $0x58] sm:$0xff] (!%p241_p9)  }
  0x14   : > { %v2435_v45 = vld [vmem:[%s3269_s5] sm:$0xff] (!%p241_p9)   ;;  %v2446_v53 = vld [vmem:[%s3269_s5 + $0xd8] sm:$0xff] (!%p241_p9)   ;;  %v2453_v60 = vld [vmem:[%s3269_s5 + $0x68] sm:$0xff] (!%p241_p9)  }
  0x15   : > { %s272_s15 = scalar_select %p271_p10, %s2692_s28, 1  ;;  %v2447_v54 = vld [vmem:[%s3269_s5 + $0x18] sm:$0xff]   ;;  %v2449_v56 = vld [vmem:[%s3269_s5 + $0x60] sm:$0xff]   ;;  %v2454_v61 = vld [vmem:[%s3269_s5 + $0xe8] sm:$0xff]  }
  0x16   : > { %v2448_v55 = vld [vmem:[%s3269_s5 + $0x98] sm:$0xff]   ;;  %v2450_v57 = vld [vmem:[%s3269_s5 + $0xe0] sm:$0xff]   ;;  %v2455_v62 = vld [vmem:[%s3269_s5 + $0x28] sm:$0xff]   ;;  %s2630_s28 = smov [#allocation3]  }
  0x17   : > { %s2368_s16 = smul.u32 40, %s272_s15  ;;  %v2451_v58 = vld [vmem:[%s3269_s5 + $0x20] sm:$0xff]   ;;  %v2456_v63 = vld [vmem:[%s3269_s5 + $0xa8] sm:$0xff]   ;;  %v2457_v0 = vld [vmem:[%s3269_s5 + $0x70] sm:$0xff]   ;;  %s2565_s15 = sshll.u32 %s2630_s28, 4  ;;  %s2566_s15 = int_to_ptr.vmem [resolvable:$false] %s2565_s15 }
  0x18   : > { %v2452_v59 = vld [vmem:[%s3269_s5 + $0xa0] sm:$0xff]   ;;  %v2458_v1 = vld [vmem:[%s3269_s5 + $0xf0] sm:$0xff]  }
  0x19   : > { %s275_s19 = scalar_lea.vmem %s3264_s0, %s2368_s16  ;;  %s2567_s16 = scalar_lea.vmem %s2566_s15, 32 }
  0x1a   : > { %v2425_v2 = vld [vmem:[%s275_s19 + $0x4] ss:$8 sps:$4 sm:$0xff]   ;;  %v2427_v3 = vld [vmem:[%s275_s19] ss:$8 sps:$4 sm:$0xff]   ;;  %v2428_v4 = vld [vmem:[%s275_s19 + $0x14] ss:$8 sps:$4 sm:$0xff]  }
  0x1b   : > { %325 = vmatprep.subr.bf16.mxu0 %v2425_v2  ;;  %v2430_v5 = vld [vmem:[%s275_s19 + $0x10] ss:$8 sps:$4 sm:$0xff]   ;;  %v282_v6 = vld [vmem:[%s275_s19 + $0x20] sm:$0xff] }
  0x1c   : > { %326 = vmatpush1.bf16.msra.mxu0 %v2427_v3  ;;  %v2050_v7 = vcombine.low %v282_v6, %v282_v6  ;;  %v2051_v8 = vcombine.high %v282_v6, %v282_v6  ;;  %v2459_v2 = vld [vmem:[%s3269_s5 + $0x30] sm:$0xff]   ;;  %v2463_v6 = vld [vmem:[%s3269_s5 + $0x38] sm:$0xff]  }
  0x1d   : > { %327 = vmatprep.subr.bf16.mxu0 %v2428_v4  ;;  %v2460_v3 = vld [vmem:[%s3269_s5 + $0xb0] sm:$0xff]   ;;  %v2461_v4 = vld [vmem:[%s3269_s5 + $0x78] sm:$0xff]  }
  0x1e   : > { %v320_v9 = vsel %vm318_vm0, %v2050_v7, 0  ;;  %v2464_v7 = vld [vmem:[%s3269_s5 + $0xb8] sm:$0xff]  }
  0x20   : > { %328 = vmatpush1.bf16.msra.mxu0 %v2430_v5  ;;  %v2462_v5 = vld [vmem:[%s3269_s5 + $0xf8] sm:$0xff]  }
  0x21   : > { %2052 = vmatprep.subr.msk.bf16.mxu0 %vm318_vm0, %v2051_v8  ;;  %v2465_v8 = vld [vmem:[%s3269_s5 + $0x140] sm:$0xff]  }
  0x24   : > { %330 = vmatpush1.bf16.msra.mxu0 %v320_v9  ;;  %v2466_v9 = vld [vmem:[%s3269_s5 + $0x1c0] sm:$0xff]  }
  0x25   : > { %2214 = vmatprep.subr.bf16.mxu0 %v2434_v20 }
  0x27   : > { %2053 = vmatmul.mubr.msk.bf16.vlgmr.msra.gmra.mrb[0].mxu0 %vm314_vm1, %v277_v10  ;;  %v2629_v10 = vmov 1966171168  }
  0x28   : > { %2215 = vmatpush3.bf16.msra.mxu0 %v2436_v21 }
  0x29   : > { %2216 = vmatprep.subr.bf16.mxu0 %v2438_v22 }
  0x2c   : > { %2217 = vmatpush3.bf16.msra.mxu0 %v2440_v23 }
  0x2d   : > { %2218 = vmatprep.subr.bf16.mxu0 %v2442_v49 }
  0x30   : > { %2219 = vmatpush3.bf16.msra.mxu0 %v2444_v51 }
  0x31   : > { %2220 = vmatprep.subr.bf16.mxu0 %v2446_v53 }
  0x34   : > { %2221 = vmatpush3.bf16.msra.mxu0 %v2448_v55  ;;  %v2468_v55 = vld [vmem:[%s3269_s5 + $0x180] sm:$0xff]  }
  0x35   : > { %2222 = vmatprep.subr.bf16.mxu0 %v2450_v57  ;;  %v2470_v57 = vld [vmem:[%s3269_s5 + $0x1c8] sm:$0xff]  }
  0x38   : > { %2223 = vmatpush3.bf16.msra.mxu0 %v2452_v59 }
  0x39   : > { %2224 = vmatprep.subr.bf16.mxu0 %v2454_v61 }
  0x3c   : > { %2225 = vmatpush3.bf16.msra.mxu0 %v2456_v63  ;;  %v2472_v63 = vld [vmem:[%s3269_s5 + $0x188] sm:$0xff]  }
  0x3d   : > { %2226 = vmatprep.subr.bf16.mxu0 %v2458_v1  ;;  %v2474_v1 = vld [vmem:[%s3269_s5 + $0x1d0] sm:$0xff]  }
  0x40   : > { %2227 = vmatpush3.bf16.msra.mxu0 %v2460_v3  ;;  %v2475_v3 = vld [vmem:[%s3269_s5 + $0x110] sm:$0xff]  }
  0x41   : > { %2228 = vmatprep.subr.bf16.mxu0 %v2462_v5  ;;  %v2477_v5 = vld [vmem:[%s3269_s5 + $0x158] sm:$0xff]  }
  0x44   : > { %2229 = vmatpush3.bf16.msra.mxu0 %v2464_v7  ;;  %v2479_v7 = vld [vmem:[%s3269_s5 + $0x118] sm:$0xff]  }
  0x45   : > { %2258 = vmatprep.subr.bf16.mxu0 %v2466_v9  ;;  %v2481_v9 = vld [vmem:[%s3269_s5 + $0x160] sm:$0xff]  }
  0x8e   : > { %v287_v11 = vpop.permute.xlu0 %286 }
  0xfa   : > { %v359_v12 = vpop.f32.mrb[0].mxu0 }
  0xfb   : > { %v360_v13 = vadd.f32 %v359_v12, %v287_v11  ;;  %v361_v14 = vpop.f32.mrb[1].mxu0  ;;  %v2844_v12 = vshrl.u32 %v366_v24, 7 }
  0xfc   : > { %v362_v15 = vadd.f32 %v361_v14, %v287_v11  ;;  %v363_v16 = vpop.f32.mrb[2].mxu0  ;;  %v457_v11 = vunpack.c.l.s4 %v2629_v10  ;;  %v2482_v10 = vld [vmem:[%s3269_s5 + $0x1e0] sm:$0xff]  }
  0xfd   : > { %v364_v17 = vpop.f32.mrb[3].mxu0 }
  0xfe   : > { %v2419_v18 = vpack.i.bf16 %v362_v15, %v360_v13  ;;  %v458_v14 = vunpack.c.0.s8 %v457_v11  ;;  %v2483_v11 = vld [vmem:[%s3269_s5 + $0x120] sm:$0xff]  }
 0x100   : > { %2420 = vrot.lane.b32.xlu1 %v2419_v18, %s2626_s22  ;;  %2415 = vrot.lane.b32.xlu0 %v2419_v18, %s2627_s23  ;;  %s270_s22 = scalar_lea.vmem [#allocation3], %s269_s18 }
 0x101   : > { %s1986_s23 = sshll.u32 %s270_s22, 4  ;;  %s3224_s23 = int_to_ptr.vmem [resolvable:$true] %s1986_s23 }
 0x102   : > { %s2561_s14 = scalar_lea.vmem %s3224_s23, 16  ;;  %p2568_p0 = scmp.lt.s32.totalorder %s3224_s23, %s2566_s15 }
 0x103   : > { %p2562_p11 = scmp.ne.s32.totalorder %s3224_s23, %s2561_s14  ;;  %p2569_p1 = scmp.lt.s32.totalorder %s2567_s16, %s2561_s14 }
 0x104   : > { %399 = vperm.xlu1 %2424, %v396_v19   ;;  %v461_v19 = vsub.s32 %v458_v14, %v2844_v12  ;;  %v2485_v14 = vld [vmem:[%s3269_s5 + $0x168] sm:$0xff]  }
 0x105   : > { %p2563_p12 = pnand %p2562_p11, %p2709_p5  ;;  %p2570_p2 = por %p2569_p1, %p2568_p0 }
 0x107   : > { %p2564_p13 = pneg %p2563_p12 }
 0x109   : > { %p2571_p3 = pnand %p2570_p2, %p2564_p13 }
 0x172   : > { %v2421_v27 = vpop.permute.xlu1 %2420  ;;  %v2416_v28 = vpop.permute.xlu0 %2415 }
 0x173   : > { %v2423_v29 = vunpack.i.h.bf16 %v2421_v27  ;;  %v2422_v30 = vunpack.i.l.bf16 %v2421_v27  ;;  %v2418_v31 = vunpack.i.h.bf16 %v2416_v28  ;;  %v2417_v32 = vunpack.i.l.bf16 %v2416_v28  ;;  %v2496_v27 = vld [vmem:[%s3269_s5 + $0x1b8] sm:$0xff]  }
 0x175   : > { %v388_v33 = vsel %vm386_vm2, %v2423_v29, %v2422_v30  ;;  %v376_v34 = vsel %vm375_vm4, %v2417_v32, %v2418_v31  ;;  %v377_v35 = vsel %vm375_vm4, %v2418_v31, %v2417_v32  ;;  %v387_v36 = vsel %vm386_vm2, %v2422_v30, %v2423_v29 }
 0x176   : > { %v390_v37 = vsel %vm381_vm3, 0.0, %v388_v33  ;;  %v392_v38 = vpack.c.bf16 %v362_v15, %v376_v34  ;;  %v2056_v39 = vpack.c.bf16 %v360_v13, %v377_v35  ;;  %v393_v41 = vpack.c.bf16 %v387_v36, %v387_v36 }
 0x177   : > { %v394_v40 = vpack.c.bf16 %v390_v37, %v390_v37  ;;  %v535_v37 = vsub.s32 1, %v2844_v12 }
 0x178   : > { %412 = vmatprep.subr.bf16.mxu1 %v392_v38  ;;  %v407_v43 = vsel %vm318_vm0, %v393_v41, 0  ;;  %v543_v38 = vsub.s32 3, %v2844_v12  ;;  %v551_v41 = vsub.s32 5, %v2844_v12 }
 0x179   : > { %2057 = vmatpush1.bf16.msk.msra.mxu1 %vm2055_vm7, %v2056_v39  ;;  %v531_v39 = vsub.s32 0, %v2844_v12 }
 0x17a   : > { %2058 = vmatprep.subr.msk.bf16.mxu1 %vm318_vm0, %v394_v40  ;;  %v539_v40 = vsub.s32 2, %v2844_v12 }
 0x17d   : > { %415 = vmatpush1.bf16.msra.mxu1 %v407_v43 }
 0x17e   : > { %2192 = vmatprep.subr.bf16.mxu1 %v2433_v42  ;;  %v559_v42 = vsub.s32 7, %v2844_v12 }
 0x180   : > { %2059 = vmatmul.mubr.msk.bf16.vlgmr.msra.gmra.mrb[0].mxu1 %vm402_vm8, %v395_v44 }
 0x181   : > { %2193 = vmatpush3.bf16.msra.mxu1 %v2435_v45 }
 0x182   : > { %2194 = vmatprep.subr.bf16.mxu1 %v2437_v46 }
 0x183   : > { %v400_v13 = vpop.permute.xlu1 %399 }
 0x185   : > { %2195 = vmatpush3.bf16.msra.mxu1 %v2439_v47 }
 0x186   : > { %2196 = vmatprep.subr.bf16.mxu1 %v2441_v48 }
 0x189   : > { %2197 = vmatpush3.bf16.msra.mxu1 %v2443_v50 }
 0x18a   : > { %2198 = vmatprep.subr.bf16.mxu1 %v2445_v52 }
 0x18d   : > { %2199 = vmatpush3.bf16.msra.mxu1 %v2447_v54  ;;  %v2467_v54 = vld [vmem:[%s3269_s5 + $0x100] sm:$0xff]  }
 0x18e   : > { %2200 = vmatprep.subr.bf16.mxu1 %v2449_v56  ;;  %v2469_v56 = vld [vmem:[%s3269_s5 + $0x148] sm:$0xff]  }
 0x191   : > { %2201 = vmatpush3.bf16.msra.mxu1 %v2451_v58  ;;  %v555_v58 = vsub.s32 6, %v2844_v12 }
 0x192   : > { %2202 = vmatprep.subr.bf16.mxu1 %v2453_v60 }
 0x195   : > { %2203 = vmatpush3.bf16.msra.mxu1 %v2455_v62  ;;  %v2471_v62 = vld [vmem:[%s3269_s5 + $0x108] sm:$0xff]  }
 0x196   : > { %2204 = vmatprep.subr.bf16.mxu1 %v2457_v0  ;;  %v2473_v0 = vld [vmem:[%s3269_s5 + $0x150] sm:$0xff]  }
 0x199   : > { %2205 = vmatpush3.bf16.msra.mxu1 %v2459_v2 }
 0x19a   : > { %2206 = vmatprep.subr.bf16.mxu1 %v2461_v4  ;;  %v2476_v4 = vld [vmem:[%s3269_s5 + $0x190] sm:$0xff]  }
 0x19d   : > { %2207 = vmatpush3.bf16.msra.mxu1 %v2463_v6  ;;  %v2478_v6 = vld [vmem:[%s3269_s5 + $0x1d8] sm:$0xff]  }
 0x19e   : > { %2236 = vmatprep.subr.bf16.mxu1 %v2465_v8  ;;  %v2480_v8 = vld [vmem:[%s3269_s5 + $0x198] sm:$0xff]  }
 0x253   : > { %v446_v15 = vpop.f32.mrb[0].mxu1 }
 0x254   : > { %v447_v16 = vadd.f32 %v446_v15, %v400_v13  ;;  %v448_v17 = vpop.f32.mrb[1].mxu1  ;;  %v2486_v15 = vld [vmem:[%s3269_s5 + $0x1e8] sm:$0xff]  }
 0x255   : > { %v449_v18 = vadd.f32 %v448_v17, %v400_v13  ;;  %v450_v20 = vpop.f32.mrb[2].mxu1  ;;  %v2484_v13 = vld [vmem:[%s3269_s5 + $0x1a0] sm:$0xff]   ;;  %v2488_v17 = vld [vmem:[%s3269_s5 + $0x1a8] sm:$0xff]  }
 0x256   : > { %v451_v21 = vpop.f32.mrb[3].mxu1  ;;  %v2491_v20 = vld [vmem:[%s3269_s5 + $0x130] sm:$0xff]  }
 0x257   : > { %v455_v22 = vcombine.low %v447_v16, %v449_v18  ;;  %v492_v23 = vcombine.high %v447_v16, %v449_v18  ;;  %v2487_v16 = vld [vmem:[%s3269_s5 + $0x128] sm:$0xff]   ;;  %v2489_v18 = vld [vmem:[%s3269_s5 + $0x170] sm:$0xff]  }
 0x258   : > { %v2492_v21 = vld [vmem:[%s3269_s5 + $0x1b0] sm:$0xff]  }
 0x259   : > { %v462_v25 = vrot.slane %v455_v22, %v461_v19  ;;  %v499_v26 = vrot.slane %v492_v23, %v461_v19  ;;  %v2493_v22 = vld [vmem:[%s3269_s5 + $0x178] sm:$0xff]  }
 0x25a   : > { %v2494_v23 = vld [vmem:[%s3269_s5 + $0x1f8] sm:$0xff]  }
 0x25b   : > { %v469_v28 = vrot.slane %v462_v25, %v461_v19  ;;  %v476_v29 = vcombine.high %v462_v25, %v462_v25  ;;  %v506_v30 = vrot.slane %v499_v26, %v461_v19  ;;  %v509_v31 = vcombine.high %v499_v26, %v499_v26  ;;  %v2495_v26 = vld [vmem:[%s3269_s5 + $0x138] sm:$0xff]  }
 0x25c   : > { %v547_v25 = vsub.s32 4, %v2844_v12 }
 0x25d   : > { %475 = vst.msk [vmem:[#allocation2] sm:$0x3] %vm2848_vm9, %v469_v28  ;;  %v483_v32 = vrot.slane %v476_v29, %v461_v19  ;;  %v486_v33 = vcombine.high %v469_v28, %v469_v28  ;;  %508 = vst.msk [vmem:[#allocation2 + $0x8] sm:$0x3] %vm2848_vm9, %v506_v30  ;;  %v516_v34 = vrot.slane %v509_v31, %v461_v19  ;;  %v2490_v19 = vld [vmem:[%s3269_s5 + $0x1f0] sm:$0xff]   ;;  %v2498_v31 = vld [vmem:[%s3269_s5 + $0x2c0] sm:$0xff]  }
 0x25e   : > { %v519_v35 = vcombine.high %v506_v30, %v506_v30  ;;  %v2497_v30 = vld [vmem:[%s3269_s5 + $0x240] sm:$0xff]  }
 0x25f   : > { %485 = vst.msk [vmem:[#allocation2 + $0x2] sm:$0x3] %vm2848_vm9, %v483_v32  ;;  %488 = vst.msk [vmem:[#allocation2 + $0x4] sm:$0x3] %vm2848_vm9, %v486_v33  ;;  %v489_v24 = vcombine.high %v483_v32, %v483_v32  ;;  %v522_v36 = vcombine.high %v516_v34, %v516_v34 }
 0x260   : > { %518 = vst.msk [vmem:[#allocation2 + $0xa] sm:$0x3] %vm2848_vm9, %v516_v34  ;;  %521 = vst.msk [vmem:[#allocation2 + $0xc] sm:$0x3] %vm2848_vm9, %v519_v35  ;;  %v2499_v34 = vld [vmem:[%s3269_s5 + $0x200] sm:$0xff]  }
 0x261   : > { %491 = vst.msk [vmem:[#allocation2 + $0x6] sm:$0x3] %vm2848_vm9, %v489_v24  ;;  %524 = vst.msk [vmem:[#allocation2 + $0xe] sm:$0x3] %vm2848_vm9, %v522_v36  ;;  %v2500_v36 = vld [vmem:[%s3269_s5 + $0x280] sm:$0xff]  }
 0x268   : > { %v2874_v43 = vld [vmem:[#allocation2] sm:$0xff]  ;;  %v2907_v61 = vld [vmem:[#allocation2 + $0x8] sm:$0xff] }
 0x269   : > { %v536_v44 = vrot.slane %v2874_v43, %v535_v37  ;;  %v544_v45 = vrot.slane %v2874_v43, %v543_v38  ;;  %v532_v46 = vrot.slane %v2874_v43, %v531_v39  ;;  %v540_v47 = vrot.slane %v2874_v43, %v539_v40 }
 0x26a   : > { %v552_v48 = vrot.slane %v2874_v43, %v551_v41  ;;  %v560_v49 = vrot.slane %v2874_v43, %v559_v42  ;;  %v2924_v2 = vrot.slane %v2907_v61, %v555_v58  ;;  %v548_v28 = vrot.slane %v2874_v43, %v547_v25 }
 0x26b   : > { %v610_v50 = vpack.c.bf16 %v536_v44, %v536_v44  ;;  %v612_v51 = vpack.c.bf16 %v544_v45, %v544_v45  ;;  %v609_v52 = vpack.c.bf16 %v532_v46, %v532_v46  ;;  %v611_v53 = vpack.c.bf16 %v540_v47, %v540_v47  ;;  %v2503_v45 = vld [vmem:[%s3269_s5 + $0x208] sm:$0xff]   ;;  %v2505_v47 = vld [vmem:[%s3269_s5 + $0x250] sm:$0xff]  }
 0x26c   : > { %v614_v59 = vpack.c.bf16 %v552_v48, %v552_v48  ;;  %v616_v60 = vpack.c.bf16 %v560_v49, %v560_v49  ;;  %v556_v29 = vrot.slane %v2874_v43, %v555_v58  ;;  %v568_v32 = vrot.slane %v2907_v61, %v535_v37  ;;  %v2501_v37 = vld [vmem:[%s3269_s5 + $0x248] sm:$0xff]   ;;  %v2506_v48 = vld [vmem:[%s3269_s5 + $0x2d0] sm:$0xff]   ;;  %v2516_v58 = vld [vmem:[%s3269_s5 + $0x2a0] sm:$0xff]  }
 0x26d   : > { %1682 = vmatprep.mubr.bf16.mxu1 %v610_v50  ;;  %1722 = vmatprep.mubr.bf16.mxu0 %v612_v51  ;;  %v576_v33 = vrot.slane %v2907_v61, %v543_v38  ;;  %v613_v35 = vpack.c.bf16 %v548_v28, %v548_v28  ;;  %v2502_v38 = vld [vmem:[%s3269_s5 + $0x2c8] sm:$0xff]   ;;  %v2507_v49 = vld [vmem:[%s3269_s5 + $0x210] sm:$0xff]   ;;  %v2509_v51 = vld [vmem:[%s3269_s5 + $0x258] sm:$0xff]  }
 0x26e   : > { %1683 = vmatmul.mubr.bf16.vlgmr.msra.gmra.mrb[4].mxu1 %v609_v52  ;;  %1723 = vmatmul.mubr.bf16.vlgmr.msra.gmra.mrb[4].mxu0 %v611_v53  ;;  %v615_v24 = vpack.c.bf16 %v556_v29, %v556_v29  ;;  %v618_v43 = vpack.c.bf16 %v568_v32, %v568_v32  ;;  %v2504_v46 = vld [vmem:[%s3269_s5 + $0x288] sm:$0xff]   ;;  %v2508_v50 = vld [vmem:[%s3269_s5 + $0x290] sm:$0xff]   ;;  %v2510_v52 = vld [vmem:[%s3269_s5 + $0x2d8] sm:$0xff]  }
 0x26f   : > { %2237 = vmatpush3.bf16.msra.mxu1 %v2467_v54  ;;  %2259 = vmatpush3.bf16.msra.mxu0 %v2468_v55  ;;  %v620_v44 = vpack.c.bf16 %v576_v33, %v576_v33  ;;  %v2511_v53 = vld [vmem:[%s3269_s5 + $0x218] sm:$0xff]   ;;  %v2513_v55 = vld [vmem:[%s3269_s5 + $0x260] sm:$0xff]  }
 0x270   : > { %1762 = vmatprep.mubr.bf16.mxu1 %v614_v59  ;;  %1802 = vmatprep.mubr.bf16.mxu0 %v616_v60  ;;  %v2512_v54 = vld [vmem:[%s3269_s5 + $0x298] sm:$0xff]   ;;  %v2517_v59 = vld [vmem:[%s3269_s5 + $0x268] sm:$0xff]   ;;  %v2545_v32 = vld [vmem:[%s3269_s5 + $0x360] sm:$0xff]  }
 0x271   : > { %2238 = vmatprep.subr.bf16.mxu1 %v2469_v56  ;;  %2260 = vmatprep.subr.bf16.mxu0 %v2470_v57  ;;  %v2514_v56 = vld [vmem:[%s3269_s5 + $0x2e0] sm:$0xff]   ;;  %v2518_v60 = vld [vmem:[%s3269_s5 + $0x2e8] sm:$0xff]   ;;  %v2541_v28 = vld [vmem:[%s3269_s5 + $0x358] sm:$0xff]  }
 0x272   : > { %v2515_v57 = vld [vmem:[%s3269_s5 + $0x220] sm:$0xff]   ;;  %v2542_v29 = vld [vmem:[%s3269_s5 + $0x3d8] sm:$0xff]  }
 0x273   : > { %2239 = vmatpush3.bf16.msra.mxu1 %v2471_v62  ;;  %2261 = vmatpush3.bf16.msra.mxu0 %v2472_v63  ;;  %v2519_v62 = vld [vmem:[%s3269_s5 + $0x228] sm:$0xff]   ;;  %v2546_v33 = vld [vmem:[%s3269_s5 + $0x3e0] sm:$0xff]  }
 0x274   : > { %2240 = vmatprep.subr.bf16.mxu1 %v2473_v0  ;;  %2262 = vmatprep.subr.bf16.mxu0 %v2474_v1  ;;  %v2520_v63 = vld [vmem:[%s3269_s5 + $0x2a8] sm:$0xff]   ;;  %v2521_v0 = vld [vmem:[%s3269_s5 + $0x270] sm:$0xff]  }
 0x275   : > { %v2522_v1 = vld [vmem:[%s3269_s5 + $0x2f0] sm:$0xff]  }
 0x277   : > { %2241 = vmatpush3.bf16.msra.mxu1 %v2475_v3  ;;  %2263 = vmatpush3.bf16.msra.mxu0 %v2476_v4  ;;  %v2523_v3 = vld [vmem:[%s3269_s5 + $0x230] sm:$0xff]  }
 0x278   : > { %2242 = vmatprep.subr.bf16.mxu1 %v2477_v5  ;;  %2264 = vmatprep.subr.bf16.mxu0 %v2478_v6  ;;  %v2524_v4 = vld [vmem:[%s3269_s5 + $0x2b0] sm:$0xff]   ;;  %v2525_v5 = vld [vmem:[%s3269_s5 + $0x278] sm:$0xff]  }
 0x279   : > { %v2526_v6 = vld [vmem:[%s3269_s5 + $0x2f8] sm:$0xff]  }
 0x27b   : > { %2243 = vmatpush3.bf16.msra.mxu1 %v2479_v7  ;;  %2265 = vmatpush3.bf16.msra.mxu0 %v2480_v8  ;;  %v2527_v7 = vld [vmem:[%s3269_s5 + $0x238] sm:$0xff]  }
 0x27c   : > { %2244 = vmatprep.subr.bf16.mxu1 %v2481_v9  ;;  %2266 = vmatprep.subr.bf16.mxu0 %v2482_v10  ;;  %v2528_v8 = vld [vmem:[%s3269_s5 + $0x2b8] sm:$0xff]   ;;  %v564_v9 = vrot.slane %v2907_v61, %v531_v39  ;;  %v2529_v10 = vld [vmem:[%s3269_s5 + $0x340] sm:$0xff]  }
 0x27d   : > { %v2531_v39 = vld [vmem:[%s3269_s5 + $0x300] sm:$0xff]  }
 0x27f   : > { %2245 = vmatpush3.bf16.msra.mxu1 %v2483_v11  ;;  %2267 = vmatpush3.bf16.msra.mxu0 %v2484_v13  ;;  %v572_v11 = vrot.slane %v2907_v61, %v539_v40  ;;  %v2530_v13 = vld [vmem:[%s3269_s5 + $0x3c0] sm:$0xff]  }
 0x280   : > { %2246 = vmatprep.subr.bf16.mxu1 %v2485_v14  ;;  %2268 = vmatprep.subr.bf16.mxu0 %v2486_v15  ;;  %v584_v14 = vrot.slane %v2907_v61, %v551_v41  ;;  %v592_v15 = vrot.slane %v2907_v61, %v559_v42  ;;  %v2532_v40 = vld [vmem:[%s3269_s5 + $0x380] sm:$0xff]   ;;  %v2533_v41 = vld [vmem:[%s3269_s5 + $0x348] sm:$0xff]  }
 0x282   : > { %v624_v42 = vpack.c.bf16 %v592_v15, %v592_v15 }
 0x283   : > { %2247 = vmatpush3.bf16.msra.mxu1 %v2487_v16  ;;  %2269 = vmatpush3.bf16.msra.mxu0 %v2488_v17  ;;  %v617_v16 = vpack.c.bf16 %v564_v9, %v564_v9  ;;  %v619_v17 = vpack.c.bf16 %v572_v11, %v572_v11 }
 0x284   : > { %2248 = vmatprep.subr.bf16.mxu1 %v2489_v18  ;;  %2270 = vmatprep.subr.bf16.mxu0 %v2490_v19  ;;  %v622_v18 = vpack.c.bf16 %v584_v14, %v584_v14  ;;  %v2534_v19 = vld [vmem:[%s3269_s5 + $0x3c8] sm:$0xff]  }
 0x287   : > { %2249 = vmatpush3.bf16.msra.mxu1 %v2491_v20  ;;  %2271 = vmatpush3.bf16.msra.mxu0 %v2492_v21  ;;  %v2535_v20 = vld [vmem:[%s3269_s5 + $0x308] sm:$0xff]  }
 0x288   : > { %2250 = vmatprep.subr.bf16.mxu1 %v2493_v22  ;;  %2272 = vmatprep.subr.bf16.mxu0 %v2494_v23  ;;  %v2536_v21 = vld [vmem:[%s3269_s5 + $0x388] sm:$0xff]   ;;  %v2537_v22 = vld [vmem:[%s3269_s5 + $0x350] sm:$0xff]  }
 0x289   : > { %v2538_v23 = vld [vmem:[%s3269_s5 + $0x3d0] sm:$0xff]  }
 0x28b   : > { %2251 = vmatpush3.bf16.msra.mxu1 %v2495_v26  ;;  %2273 = vmatpush3.bf16.msra.mxu0 %v2496_v27  ;;  %v2539_v26 = vld [vmem:[%s3269_s5 + $0x310] sm:$0xff]  }
 0x28c   : > { %2280 = vmatprep.subr.bf16.mxu1 %v2497_v30  ;;  %2302 = vmatprep.subr.bf16.mxu0 %v2498_v31  ;;  %v2540_v27 = vld [vmem:[%s3269_s5 + $0x390] sm:$0xff]   ;;  %v2543_v30 = vld [vmem:[%s3269_s5 + $0x318] sm:$0xff]  }
 0x28d   : > { %v2544_v31 = vld [vmem:[%s3269_s5 + $0x398] sm:$0xff]  }
 0x28e   : > { %1763 = vmatmul.mubr.bf16.vlgmr.msra.gmra.mrb[8].mxu1 %v613_v35  ;;  %1803 = vmatmul.mubr.bf16.vlgmr.msra.gmra.mrb[8].mxu0 %v615_v24  ;;  %v2548_v35 = vld [vmem:[%s3269_s5 + $0x3a0] sm:$0xff]   ;;  %v2549_v24 = vld [vmem:[%s3269_s5 + $0x368] sm:$0xff]  }
 0x28f   : > { %2281 = vmatpush3.bf16.msra.mxu1 %v2499_v34  ;;  %1842 = vmatprep.mubr.bf16.mxu1 %v618_v43  ;;  %v2547_v34 = vld [vmem:[%s3269_s5 + $0x320] sm:$0xff]   ;;  %v2551_v43 = vld [vmem:[%s3269_s5 + $0x328] sm:$0xff]  }
 0x290   : > { %2303 = vmatpush3.bf16.msra.mxu0 %v2500_v36  ;;  %1882 = vmatprep.mubr.bf16.mxu0 %v620_v44  ;;  %v2550_v36 = vld [vmem:[%s3269_s5 + $0x3e8] sm:$0xff]   ;;  %v2554_v44 = vld [vmem:[%s3269_s5 + $0x3f0] sm:$0xff]  }
 0x291   : > { %2282 = vmatprep.subr.bf16.mxu1 %v2501_v37  ;;  %2304 = vmatprep.subr.bf16.mxu0 %v2502_v38  ;;  %v2552_v37 = vld [vmem:[%s3269_s5 + $0x3a8] sm:$0xff]   ;;  %v2553_v38 = vld [vmem:[%s3269_s5 + $0x370] sm:$0xff]  }
 0x293   : > { %2283 = vmatpush3.bf16.msra.mxu1 %v2503_v45  ;;  %v2555_v45 = vld [vmem:[%s3269_s5 + $0x330] sm:$0xff]  }
 0x294   : > { %2305 = vmatpush3.bf16.msra.mxu0 %v2504_v46  ;;  %2284 = vmatprep.subr.bf16.mxu1 %v2505_v47  ;;  %v2556_v46 = vld [vmem:[%s3269_s5 + $0x3b0] sm:$0xff]   ;;  %v2557_v47 = vld [vmem:[%s3269_s5 + $0x378] sm:$0xff]  }
 0x295   : > { %2306 = vmatprep.subr.bf16.mxu0 %v2506_v48  ;;  %v2558_v48 = vld [vmem:[%s3269_s5 + $0x3f8] sm:$0xff]  }
 0x297   : > { %2285 = vmatpush3.bf16.msra.mxu1 %v2507_v49  ;;  %v2559_v49 = vld [vmem:[%s3269_s5 + $0x338] sm:$0xff]  }
 0x298   : > { %2307 = vmatpush3.bf16.msra.mxu0 %v2508_v50  ;;  %2286 = vmatprep.subr.bf16.mxu1 %v2509_v51  ;;  %v2560_v50 = vld [vmem:[%s3269_s5 + $0x3b8] sm:$0xff]   ;;  %v580_v51 = vrot.slane %v2907_v61, %v547_v25 }
 0x299   : > { %2308 = vmatprep.subr.bf16.mxu0 %v2510_v52 }
 0x29a   : > { %v621_v52 = vpack.c.bf16 %v580_v51, %v580_v51 }
 0x29b   : > { %2287 = vmatpush3.bf16.msra.mxu1 %v2511_v53  ;;  %v623_v53 = vpack.c.bf16 %v2924_v2, %v2924_v2 }
 0x29c   : > { %2309 = vmatpush3.bf16.msra.mxu0 %v2512_v54  ;;  %2288 = vmatprep.subr.bf16.mxu1 %v2513_v55 }
 0x29d   : > { %2310 = vmatprep.subr.bf16.mxu0 %v2514_v56 }
 0x29f   : > { %2289 = vmatpush3.bf16.msra.mxu1 %v2515_v57 }
 0x2a0   : > { %2311 = vmatpush3.bf16.msra.mxu0 %v2516_v58  ;;  %2290 = vmatprep.subr.bf16.mxu1 %v2517_v59 }
 0x2a1   : > { %2312 = vmatprep.subr.bf16.mxu0 %v2518_v60 }
 0x2a3   : > { %2291 = vmatpush3.bf16.msra.mxu1 %v2519_v62 }
 0x2a4   : > { %2313 = vmatpush3.bf16.msra.mxu0 %v2520_v63  ;;  %2292 = vmatprep.subr.bf16.mxu1 %v2521_v0 }
 0x2a5   : > { %2314 = vmatprep.subr.bf16.mxu0 %v2522_v1 }
 0x2a7   : > { %2293 = vmatpush3.bf16.msra.mxu1 %v2523_v3 }
 0x2a8   : > { %2315 = vmatpush3.bf16.msra.mxu0 %v2524_v4  ;;  %2294 = vmatprep.subr.bf16.mxu1 %v2525_v5 }
 0x2a9   : > { %2316 = vmatprep.subr.bf16.mxu0 %v2526_v6 }
 0x2ab   : > { %2295 = vmatpush3.bf16.msra.mxu1 %v2527_v7 }
 0x2ac   : > { %2317 = vmatpush3.bf16.msra.mxu0 %v2528_v8  ;;  %2324 = vmatprep.subr.bf16.mxu1 %v2529_v10 }
 0x2ad   : > { %2346 = vmatprep.subr.bf16.mxu0 %v2530_v13 }
 0x2ae   : > { %1843 = vmatmul.mubr.bf16.vlgmr.msra.gmra.mrb[12].mxu1 %v617_v16 }
 0x2af   : > { %1883 = vmatmul.mubr.bf16.vlgmr.msra.gmra.mrb[12].mxu0 %v619_v17  ;;  %2325 = vmatpush3.bf16.msra.mxu1 %v2531_v39 }
 0x2b0   : > { %1922 = vmatprep.mubr.bf16.mxu1 %v622_v18  ;;  %2347 = vmatpush3.bf16.msra.mxu0 %v2532_v40 }
 0x2b1   : > { %1962 = vmatprep.mubr.bf16.mxu0 %v624_v42  ;;  %2326 = vmatprep.subr.bf16.mxu1 %v2533_v41 }
 0x2b2   : > { %2348 = vmatprep.subr.bf16.mxu0 %v2534_v19 }
 0x2b3   : > { %2327 = vmatpush3.bf16.msra.mxu1 %v2535_v20 }
 0x2b4   : > { %2349 = vmatpush3.bf16.msra.mxu0 %v2536_v21  ;;  %2328 = vmatprep.subr.bf16.mxu1 %v2537_v22 }
 0x2b5   : > { %2350 = vmatprep.subr.bf16.mxu0 %v2538_v23 }
 0x2b7   : > { %2329 = vmatpush3.bf16.msra.mxu1 %v2539_v26 }
 0x2b8   : > { %2351 = vmatpush3.bf16.msra.mxu0 %v2540_v27  ;;  %2330 = vmatprep.subr.bf16.mxu1 %v2541_v28 }
 0x2b9   : > { %2352 = vmatprep.subr.bf16.mxu0 %v2542_v29 }
 0x2bb   : > { %2331 = vmatpush3.bf16.msra.mxu1 %v2543_v30 }
 0x2bc   : > { %2353 = vmatpush3.bf16.msra.mxu0 %v2544_v31  ;;  %2332 = vmatprep.subr.bf16.mxu1 %v2545_v32 }
 0x2bd   : > { %2354 = vmatprep.subr.bf16.mxu0 %v2546_v33  ;;  %v625_v33 = vld [vmem:[%s3270_s6] sm:$0x1] }
 0x2bf   : > { %2333 = vmatpush3.bf16.msra.mxu1 %v2547_v34 }
 0x2c0   : > { %2355 = vmatpush3.bf16.msra.mxu0 %v2548_v35  ;;  %2334 = vmatprep.subr.bf16.mxu1 %v2549_v24 }
 0x2c1   : > { %2356 = vmatprep.subr.bf16.mxu0 %v2550_v36 }
 0x2c3   : > { %2335 = vmatpush3.bf16.msra.mxu1 %v2551_v43 }
 0x2c4   : > { %2357 = vmatpush3.bf16.msra.mxu0 %v2552_v37  ;;  %2336 = vmatprep.subr.bf16.mxu1 %v2553_v38 }
 0x2c5   : > { %2358 = vmatprep.subr.bf16.mxu0 %v2554_v44 }
 0x2c7   : > { %2337 = vmatpush3.bf16.msra.mxu1 %v2555_v45 }
 0x2c8   : > { %2359 = vmatpush3.bf16.msra.mxu0 %v2556_v46  ;;  %2338 = vmatprep.subr.bf16.mxu1 %v2557_v47 }
 0x2c9   : > { %2360 = vmatprep.subr.bf16.mxu0 %v2558_v48 }
 0x2cb   : > { %2339 = vmatpush3.bf16.msra.mxu1 %v2559_v49 }
 0x2cc   : > { %2361 = vmatpush3.bf16.msra.mxu0 %v2560_v50 }
 0x2ce   : > { %1923 = vmatmul.mubr.bf16.vlgmr.msra.gmra.mrb[16].mxu1 %v621_v52 }
 0x2cf   : > { %1963 = vmatmul.mubr.bf16.vlgmr.msra.gmra.mrb[16].mxu0 %v623_v53 }
 0x341   : > { %v2208_v54 = vpop.f32.mrb[4].mxu1  ;;  %v2230_v55 = vpop.f32.mrb[4].mxu0 }
 0x342   : > { %v2209_v56 = vpop.f32.mrb[5].mxu1  ;;  %v2231_v57 = vpop.f32.mrb[5].mxu0 }
 0x343   : > { %v2210_v58 = vadd.f32 %v2209_v56, %v2208_v54  ;;  %v2232_v59 = vadd.f32 %v2231_v57, %v2230_v55  ;;  %v2211_v60 = vpop.f32.mrb[6].mxu1  ;;  %v2233_v62 = vpop.f32.mrb[6].mxu0 }
 0x344   : > { %v2212_v12 = vpop.f32.mrb[7].mxu1  ;;  %v2234_v63 = vpop.f32.mrb[7].mxu0 }
 0x345   : > { %v1725_v61 = vadd.f32 %v2232_v59, %v2210_v58 }
 0x361   : > { %v2252_v25 = vpop.f32.mrb[8].mxu1  ;;  %v2274_v0 = vpop.f32.mrb[8].mxu0 }
 0x362   : > { %v2253_v1 = vpop.f32.mrb[9].mxu1  ;;  %v2275_v3 = vpop.f32.mrb[9].mxu0 }
 0x363   : > { %v2254_v4 = vadd.f32 %v2253_v1, %v2252_v25  ;;  %v2276_v5 = vadd.f32 %v2275_v3, %v2274_v0  ;;  %v2255_v2 = vpop.f32.mrb[10].mxu1  ;;  %v2277_v6 = vpop.f32.mrb[10].mxu0 }
 0x364   : > { %v2256_v7 = vpop.f32.mrb[11].mxu1  ;;  %v2278_v8 = vpop.f32.mrb[11].mxu0 }
 0x365   : > { %v1765_v9 = vadd.f32 %v2254_v4, %v1725_v61 }
 0x367   : > { %v1805_v10 = vadd.f32 %v2276_v5, %v1765_v9 }
 0x381   : > { %v2296_v11 = vpop.f32.mrb[12].mxu1 }
 0x382   : > { %v2318_v13 = vpop.f32.mrb[12].mxu0  ;;  %v2297_v14 = vpop.f32.mrb[13].mxu1 }
 0x383   : > { %v2298_v39 = vadd.f32 %v2297_v14, %v2296_v11  ;;  %v2319_v15 = vpop.f32.mrb[13].mxu0  ;;  %v2299_v16 = vpop.f32.mrb[14].mxu1 }
 0x384   : > { %v2320_v40 = vadd.f32 %v2319_v15, %v2318_v13  ;;  %v2321_v17 = vpop.f32.mrb[14].mxu0  ;;  %v2300_v41 = vpop.f32.mrb[15].mxu1 }
 0x385   : > { %v1845_v18 = vadd.f32 %v2298_v39, %v1805_v10  ;;  %v2322_v19 = vpop.f32.mrb[15].mxu0 }
 0x387   : > { %v1885_v42 = vadd.f32 %v2320_v40, %v1845_v18 }
 0x3a1   : > { %v2340_v20 = vpop.f32.mrb[16].mxu1 }
 0x3a2   : > { %v2362_v21 = vpop.f32.mrb[16].mxu0  ;;  %v2341_v22 = vpop.f32.mrb[17].mxu1 }
 0x3a3   : > { %v2342_v23 = vadd.f32 %v2341_v22, %v2340_v20  ;;  %v2363_v26 = vpop.f32.mrb[17].mxu0  ;;  %v2343_v27 = vpop.f32.mrb[18].mxu1 }
 0x3a4   : > { %v2364_v28 = vadd.f32 %v2363_v26, %v2362_v21  ;;  %v2365_v29 = vpop.f32.mrb[18].mxu0  ;;  %v2344_v30 = vpop.f32.mrb[19].mxu1 }
 0x3a5   : > { %v1925_v31 = vadd.f32 %v2342_v23, %v1885_v42  ;;  %v2366_v32 = vpop.f32.mrb[19].mxu0 }
 0x3a7   : > { %v1965_v34 = vadd.f32 %v2364_v28, %v1925_v31 }
 0x3a9   : > { %v1970_v35 = vadd.f32 %v1965_v34, %v625_v33 }
 0x3ab   : > { %1972 = vst.msk [vmem:[%s270_s22] sm:$0x1] %vm1971_vm10, %v1970_v35 }
 0x3ac   : > { %2574 = shalt.err (!%p2571_p3)
}
 0x3ad   : > { %s2575_s17 = scalar_lea.hbm %s3222_s9, 16  ;;  %s2579_s20 = scalar_lea.hbm %s3271_s7, 32 }
 0x3ae   : > { %p2576_p4 = scmp.ne.s32.totalorder %s3222_s9, %s2575_s17  ;;  %p2580_p9 = scmp.lt.u32.totalorder %s3222_s9, %s3271_s7 }
 0x3af   : > { %p2581_p10 = scmp.lt.u32.totalorder %s2579_s20, %s2575_s17  ;;  %p2583_p12 = scmp.lt.u32.totalorder %s2575_s17, %s3222_s9 }
 0x3b0   : > { %p2577_p7 = pnand %p2576_p4, %p2709_p5 }
 0x3b1   : > { %p2582_p11 = por %p2581_p10, %p2580_p9 }
 0x3b2   : > { %p2578_p8 = pneg %p2577_p7 }
 0x3b3   : > { %p2584_p13 = por %p2583_p12, %p2582_p11 }
 0x3b5   : > { %p2585_p0 = pnand %p2584_p13, %p2578_p8 }
 0x3b7   : > { %2588 = shalt.err (!%p2585_p0)
}
 0x3b8   : > { %2369 = dma.vmem_to_hbm [thread:$0]  (%p2709_p5), %s3224_s23, 16, %s3222_s9, %s1974_s13  }
 0x3b9 PF: > { %p2375_p1 = scmp.ge.s32.totalorder %s2623_s27, 2  ;;  %s1998_s29 = sand.u32 1, %s2611_s24  }
 0x3ba   : > { %s1999_s8 = scalar_lea.sflag [#allocation4], %s1998_s29 }
 0x3bb   : > { %p2372_p2 = pnand %p2375_p1, %p2713_p6 }
 0x3bd   : > { %2606 = dma.done.wait (!%p2372_p2), %s1999_s8, 16  }
 0x3be   : > { %2608 = vsyncadd (!%p2372_p2), %s1999_s8, 4294967280  ;;  %p17_p3 = scmp.ge.s32.totalorder %s2696_s30, 4   ;;  %s3276_s24 = smov %s2615_s25 }
 0x3bf   : > { %s3277_s25 = smov %s2619_s26  ;;  %s3278_s26 = smov %s2707_s10 }
 0x3c0   : > { %s3279_s27 = smov %s2696_s30  ;;  %19 = sbr.rel (!%p17_p3) target bundleno = 3 (0x3), region = 83 }
 0x3c7   :  { %2003 = vsyncpa [#allocation4], 1 }
 0x3c8   :  { %2005 = vsyncpa [#allocation4 + $0x1], 1 }

</bundles_post_ra>
